<compile_context>
chip_gen: v7x
topology: tpu7x:2x2x1
jax: 0.10.0
libtpu: 0.0.40
codegen_flags: <defaults>
</compile_context>

<pallas_src>
import jax
import jax.numpy as jnp
from jax.experimental import pallas as pl
from jax.experimental.pallas import tpu as pltpu


def bilinear_kernel(x1_ref, x2_ref, w_ref, b_ref, o_ref, acc_ref):
    # x1_ref: (tm, F)  -- full contraction dim, resident across the j sweep
    # x2_ref: (tm, tn) -- column block matching the W column block
    # w_ref : (F, tn)  -- column block of W
    # b_ref : (1,)     -- scalar bias in SMEM
    # o_ref : (tm, 1)  -- output block (written only in the finalize branch)
    # acc_ref: (tm, 1) f32 VMEM scratch accumulator
    j = pl.program_id(1)

    @pl.when(j == 0)
    def _init():
        acc_ref[...] = jnp.zeros_like(acc_ref)

    # (tm, F) @ (F, tn) on the MXU, f32 accumulation.
    t = jnp.dot(x1_ref[...], w_ref[...], preferred_element_type=jnp.float32)
    # Elementwise multiply with the matching x2 columns + lane reduction (VPU + XLU).
    acc_ref[...] += jnp.sum(t * x2_ref[...].astype(jnp.float32), axis=-1, keepdims=True)

    @pl.when(j == pl.num_programs(1) - 1)
    def _finalize():
        o_ref[...] = (acc_ref[...] + b_ref[0]).astype(o_ref.dtype)


def _choose_tiles(B, F, itemsize=4, budget_bytes=12 * 1024 * 1024):
    """Pick (tm, tn): exact divisors, hardware-aligned, fitting a conservative VMEM budget."""

    def pick(dim, candidates):
        for c in candidates:
            if c <= dim and dim % c == 0:
                return c
        return dim  # fall back to the full dim (always legal for BlockSpec)

    tm = pick(B, (128, 64, 32, 16, 8))        # batch tile: multiple of 8 (f32 sublane)
    tn = pick(F, (512, 256, 128))             # W-column tile: 256-aligned on v6e/v7x, 128 on v5e

    def footprint(tm_, tn_):
        # Every pipelined input is double-buffered; output + accumulator are small.
        x1 = tm_ * F * itemsize * 2
        x2 = tm_ * tn_ * itemsize * 2
        w = F * tn_ * itemsize * 2
        out = tm_ * 4 * 2
        acc = tm_ * 4
        return x1 + x2 + w + out + acc

    # Shrink tiles (keeping exact divisibility) until we fit the budget.
    while footprint(tm, tn) > budget_bytes and tn > 128 and tn % 2 == 0 and F % (tn // 2) == 0:
        tn //= 2
    while footprint(tm, tn) > budget_bytes and tm > 8 and tm % 2 == 0 and B % (tm // 2) == 0:
        tm //= 2
    return tm, tn


def bilinear_forward(x1, x2, weight, bias):
    """x1, x2: (B, F); weight: (1, F, F) as in nn.Bilinear; bias: (1,). Returns (B, 1)."""
    B, F = x1.shape
    w2d = weight[0]                     # (F, F): the single output-feature slice
    b1d = bias.reshape(1)               # (1,) scalar, lives in SMEM

    tm, tn = _choose_tiles(B, F, itemsize=jnp.dtype(x1.dtype).itemsize)
    grid = (pl.cdiv(B, tm), pl.cdiv(F, tn))   # (batch tiles, W-column tiles); j innermost

    cost = pl.CostEstimate(
        flops=2 * B * F * F + 2 * B * F,
        transcendentals=0,
        bytes_accessed=4 * (2 * B * F + F * F + B),
    )

    return pl.pallas_call(
        bilinear_kernel,
        out_shape=jax.ShapeDtypeStruct((B, 1), x1.dtype),
        grid=grid,
        in_specs=[
            pl.BlockSpec((tm, F), lambda i, j: (i, 0)),    # x1: depends only on batch tile
            pl.BlockSpec((tm, tn), lambda i, j: (i, j)),   # x2: matching column block
            pl.BlockSpec((F, tn), lambda i, j: (0, j)),    # W: depends only on column tile
            pl.BlockSpec(memory_space=pltpu.MemorySpace.SMEM),  # bias scalar in SMEM
        ],
        out_specs=pl.BlockSpec((tm, 1), lambda i, j: (i, 0)),
        scratch_shapes=[pltpu.VMEM((tm, 1), jnp.float32)],
        compiler_params=pltpu.CompilerParams(
            dimension_semantics=("parallel", "arbitrary"),
        ),
        cost_estimate=cost,
    )(x1, x2, w2d, b1d)


def _run_case(key, B, F):
    k1, k2, kw, kb = jax.random.split(key, 4)
    x1 = jax.random.normal(k1, (B, F), dtype=jnp.float32)
    x2 = jax.random.normal(k2, (B, F), dtype=jnp.float32)

    # nn.Bilinear init: uniform(-bound, bound), bound = 1/sqrt(in1_features)
    bound = 1.0 / jnp.sqrt(jnp.float32(F))
    weight = jax.random.uniform(kw, (1, F, F), dtype=jnp.float32, minval=-bound, maxval=bound)
    bias = jax.random.uniform(kb, (1,), dtype=jnp.float32, minval=-bound, maxval=bound)

    out = bilinear_forward(x1, x2, weight, bias)
    jax.block_until_ready(out)

    ref = jnp.einsum("bi,oij,bj->bo", x1, weight, x2) + bias
    assert out.shape == (B, 1), (out.shape, (B, 1))
    assert jnp.allclose(out, ref, atol=5e-3, rtol=1e-3), (out, ref)


if __name__ == "__main__":
    key = jax.random.PRNGKey(0)
    k_small, k_big = jax.random.split(key)

    # Small shape consistent with the module (batch=8, num_feats=32): single-tile grid.
    _run_case(k_small, B=8, F=32)
    # Slightly larger shape that exercises multiple batch tiles and the j-accumulation path.
    _run_case(k_big, B=24, F=384)

    print("KERNEL_OK")
</pallas_src>

<mosaic_0001>
module attributes {stable_mosaic.version = 11 : i64} {
  func.func @bilinear_kernel(%arg0: i32, %arg1: i32, %arg2: memref<8x32xf32, #tpu.memory_space<vmem>>, %arg3: memref<8x32xf32, #tpu.memory_space<vmem>>, %arg4: memref<32x32xf32, #tpu.memory_space<vmem>>, %arg5: memref<1xf32, #tpu.memory_space<smem>>, %arg6: memref<8x1xf32, #tpu.memory_space<vmem>>, %arg7: memref<8x1xf32, #tpu.memory_space<vmem>>) attributes {dimension_semantics = [#tpu.dimension_semantics<parallel>, #tpu.dimension_semantics<arbitrary>], iteration_bounds = array<i64: 1, 1>, scalar_prefetch = 0 : i64, scratch_operands = 1 : i64, tpu.core_type = #tpu.core_type<tc>, window_params = [{transform_indices = @transform_0, window_bounds = array<i64: 8, 32>}, {transform_indices = @transform_1, window_bounds = array<i64: 8, 32>}, {transform_indices = @transform_2, window_bounds = array<i64: 32, 32>}, {transform_indices = @transform_3, window_bounds = array<i64: 1>}, {transform_indices = @transform_4, window_bounds = array<i64: 8, 1>}]} {
    %c0_i32 = arith.constant 0 : i32
    %0 = arith.cmpi eq, %arg1, %c0_i32 : i32
    %1 = arith.extui %0 : i1 to i32
    %c0_i32_0 = arith.constant 0 : i32
    %2 = arith.cmpi ne, %1, %c0_i32_0 : i32
    scf.if %2 {
      %cst_13 = arith.constant 0.000000e+00 : f32
      %16 = vector.broadcast %cst_13 : f32 to vector<8x1xf32>
      %c0_14 = arith.constant 0 : index
      %c0_15 = arith.constant 0 : index
      %17 = vector.load %arg7[%c0_14, %c0_15] : memref<8x1xf32, #tpu.memory_space<vmem>>, vector<8x1xf32>
      tpu.vector_store %arg7[%c0_14, %c0_15], %16 {strides = array<i32>} : memref<8x1xf32, #tpu.memory_space<vmem>>, vector<8x1xf32>,
    } else {
    }
    %c0 = arith.constant 0 : index
    %c0_1 = arith.constant 0 : index
    %3 = vector.load %arg2[%c0, %c0_1] : memref<8x32xf32, #tpu.memory_space<vmem>>, vector<8x32xf32>
    %c0_2 = arith.constant 0 : index
    %c0_3 = arith.constant 0 : index
    %4 = vector.load %arg4[%c0_2, %c0_3] : memref<32x32xf32, #tpu.memory_space<vmem>>, vector<32x32xf32>
    %cst = arith.constant dense<0.000000e+00> : vector<8x32xf32>
    %5 = tpu.matmul %3, %4, %cst {dimension_numbers = #tpu.dot_dimension_numbers<[1], [0], [0], [1], [0, 0, 1, 1], [], []>} : vector<8x32xf32>, vector<32x32xf32>, vector<8x32xf32> -> vector<8x32xf32>
    %c0_4 = arith.constant 0 : index
    %c0_5 = arith.constant 0 : index
    %6 = vector.load %arg7[%c0_4, %c0_5] : memref<8x1xf32, #tpu.memory_space<vmem>>, vector<8x1xf32>
    %c0_6 = arith.constant 0 : index
    %c0_7 = arith.constant 0 : index
    %7 = vector.load %arg3[%c0_6, %c0_7] : memref<8x32xf32, #tpu.memory_space<vmem>>, vector<8x32xf32>
    %8 = arith.mulf %5, %7 : vector<8x32xf32>
    %cst_8 = arith.constant dense<0.000000e+00> : vector<8xf32>
    %9 = vector.multi_reduction <add>, %8, %cst_8 [1] : vector<8x32xf32> to vector<8xf32>
    %10 = vector.shape_cast %9 : vector<8xf32> to vector<8x1xf32>
    %11 = arith.addf %6, %10 : vector<8x1xf32>
    %c0_9 = arith.constant 0 : index
    %c0_10 = arith.constant 0 : index
    %12 = vector.load %arg7[%c0_9, %c0_10] : memref<8x1xf32, #tpu.memory_space<vmem>>, vector<8x1xf32>
    tpu.vector_store %arg7[%c0_9, %c0_10], %11 {strides = array<i32>} : memref<8x1xf32, #tpu.memory_space<vmem>>, vector<8x1xf32>,
    %c0_i32_11 = arith.constant 0 : i32
    %13 = arith.cmpi eq, %arg1, %c0_i32_11 : i32
    %14 = arith.extui %13 : i1 to i32
    %c0_i32_12 = arith.constant 0 : i32
    %15 = arith.cmpi ne, %14, %c0_i32_12 : i32
    scf.if %15 {
      %c0_13 = arith.constant 0 : index
      %c0_14 = arith.constant 0 : index
      %16 = vector.load %arg7[%c0_13, %c0_14] : memref<8x1xf32, #tpu.memory_space<vmem>>, vector<8x1xf32>
      %c0_15 = arith.constant 0 : index
      %17 = memref.load %arg5[%c0_15] : memref<1xf32, #tpu.memory_space<smem>>
      %18 = vector.broadcast %17 : f32 to vector<8x1xf32>
      %19 = arith.addf %16, %18 : vector<8x1xf32>
      %c0_16 = arith.constant 0 : index
      %c0_17 = arith.constant 0 : index
      %20 = vector.load %arg6[%c0_16, %c0_17] : memref<8x1xf32, #tpu.memory_space<vmem>>, vector<8x1xf32>
      tpu.vector_store %arg6[%c0_16, %c0_17], %19 {strides = array<i32>} : memref<8x1xf32, #tpu.memory_space<vmem>>, vector<8x1xf32>,
    } else {
    }
    return
  }
  func.func @transform_0(%arg0: i32, %arg1: i32) -> (i32, i32) {
    %c0_i32 = arith.constant 0 : i32
    %c0_i32_0 = arith.constant 0 : i32
    return %arg0, %c0_i32 : i32, i32
  }
  func.func @transform_1(%arg0: i32, %arg1: i32) -> (i32, i32) {
    %c0_i32 = arith.constant 0 : i32
    return %arg0, %arg1 : i32, i32
  }
  func.func @transform_2(%arg0: i32, %arg1: i32) -> (i32, i32) {
    %c0_i32 = arith.constant 0 : i32
    %c0_i32_0 = arith.constant 0 : i32
    return %c0_i32, %arg1 : i32, i32
  }
  func.func @transform_3(%arg0: i32, %arg1: i32) -> i32 {
    %c0_i32 = arith.constant 0 : i32
    %c0_i32_0 = arith.constant 0 : i32
    return %c0_i32 : i32
  }
  func.func @transform_4(%arg0: i32, %arg1: i32) -> (i32, i32) {
    %c0_i32 = arith.constant 0 : i32
    %c0_i32_0 = arith.constant 0 : i32
    return %arg0, %c0_i32 : i32, i32
  }
}

</mosaic_0001>

<bundles_post_ra>
// kernel: tpu_custom_call.1
= control target key start
LH: loop header
LB: loop body
LE: loop exit
PB: predicated region body
PF: predicated region fallthrough
CT: control target
= control target key end

     0   :  { %10 = vsyncpa [#allocation5], 0  ;;  %s342_s0 = inlined_call_operand.hbm [shape: f32[8,32], index: 0, kind: input, shape index: {}]   ;;  %s343_s1 = inlined_call_operand.hbm [shape: f32[8,32], index: 1, kind: input, shape index: {}]   ;;  %s344_s2 = inlined_call_operand.hbm [shape: f32[32,32], index: 2, kind: input, shape index: {}]   ;;  %s345_s3 = inlined_call_operand.<no memory space> [shape: f32[1], index: 3, kind: input, shape index: {}]   ;;  %s346_s4 = inlined_call_operand.vmem [shape: f32[8,1], index: 4, kind: output, shape index: {}]  }
   0x1   :  { %11 = vsyncpa [#allocation7], 0  ;;  %s264_s15 = smov [#allocation6]   ;;  %s265_s17 = smov [#allocation4]  }
   0x2   :  { %s28_s16 = sshll.u32 %s264_s15, 4  ;;  %s18_s18 = sshll.u32 %s265_s17, 4  ;;  %s29_s16 = int_to_ptr.vmem [resolvable:$true] %s28_s16  ;;  %s19_s18 = int_to_ptr.vmem [resolvable:$true] %s18_s18 }
   0x3   :  { %s194_s21 = scalar_lea.hbm %s343_s1, 128 }
   0x4   :  { %p195_p0 = scmp.ne.s32.totalorder %s343_s1, %s194_s21  ;;  %p198_p1 = scmp.lt.u32.totalorder %s194_s21, %s343_s1 }
   0x6   :  { %p200_p2 = pnand %p198_p1, %p195_p0 }
   0x8   :  { %203 = shalt.err (!%p200_p2)
}
   0x9   :  { %s204_s26 = scalar_lea.vmem %s29_s16, 128  ;;  %p209_p4 = scmp.lt.s32.totalorder %s29_s16, %s29_s16 }
   0xa   :  { %p205_p3 = scmp.ne.s32.totalorder %s29_s16, %s204_s26  ;;  %p210_p5 = scmp.lt.s32.totalorder %s204_s26, %s204_s26 }
   0xc   :  { %p211_p6 = por %p210_p5, %p209_p4 }
   0xe   :  { %p212_p7 = pnand %p211_p6, %p205_p3 }
  0x10   :  { %215 = shalt.err (!%p212_p7)
}
  0x11   :  { %31 = dma.hbm_to_vmem [thread:$0]  %s343_s1, 128, %s29_s16, [#allocation7]  }
  0x12   :  { %s216_s5 = scalar_lea.hbm %s342_s0, 128 }
  0x13   :  { %p217_p8 = scmp.ne.s32.totalorder %s342_s0, %s216_s5  ;;  %p220_p9 = scmp.lt.u32.totalorder %s216_s5, %s342_s0 }
  0x15   :  { %p222_p10 = pnand %p220_p9, %p217_p8 }
  0x17   :  { %225 = shalt.err (!%p222_p10)
}
  0x18   :  { %s226_s10 = scalar_lea.vmem %s19_s18, 128  ;;  %p231_p12 = scmp.lt.s32.totalorder %s19_s18, %s19_s18 }
  0x19   :  { %p227_p11 = scmp.ne.s32.totalorder %s19_s18, %s226_s10  ;;  %p232_p13 = scmp.lt.s32.totalorder %s226_s10, %s226_s10 }
  0x1b   :  { %p233_p0 = por %p232_p13, %p231_p12 }
  0x1d   :  { %p234_p1 = pnand %p233_p0, %p227_p11 }
  0x1f   :  { %237 = shalt.err (!%p234_p1)
}
  0x20   :  { %21 = dma.hbm_to_vmem [thread:$0]  %s342_s0, 128, %s19_s18, [#allocation5]  }
  0x21   :  { %s266_s12 = smov [#allocation8]   ;;  %s238_s16 = scalar_lea.hbm %s344_s2, 512 }
  0x22   :  { %s37_s13 = sshll.u32 %s266_s12, 4  ;;  %p239_p2 = scmp.ne.s32.totalorder %s344_s2, %s238_s16  ;;  %s38_s13 = int_to_ptr.vmem [resolvable:$true] %s37_s13 }
  0x23   :  { %p242_p3 = scmp.lt.u32.totalorder %s238_s16, %s344_s2 }
  0x25   :  { %p244_p4 = pnand %p242_p3, %p239_p2 }
  0x27   :  { %247 = shalt.err (!%p244_p4)
}
  0x28   :  { %s248_s22 = scalar_lea.vmem %s38_s13, 512  ;;  %p253_p6 = scmp.lt.s32.totalorder %s38_s13, %s38_s13 }
  0x29   :  { %p249_p5 = scmp.ne.s32.totalorder %s38_s13, %s248_s22  ;;  %p254_p7 = scmp.lt.s32.totalorder %s248_s22, %s248_s22 }
  0x2b   :  { %p255_p8 = por %p254_p7, %p253_p6 }
  0x2d   :  { %p256_p9 = pnand %p255_p8, %p249_p5 }
  0x2f   :  { %259 = shalt.err (!%p256_p9)
}
  0x30   :  { %s267_s0 = smov 128   ;;  %s268_s18 = smov 8  }
  0x31   :  { %43 = dma.hbm_to_vmem [thread:$0]  %s344_s2, 512, %s38_s13, [#allocation7], %s267_s0, %s267_s0, %s268_s18  }
  0x32   :  { %260 = dma.done.wait [#allocation5], 128  }
  0x33   :  { %261 = vsyncadd [#allocation5], 4294967168 }
  0x34   :  { %262 = dma.done.wait [#allocation7], 640  }
  0x35   :  { %263 = vsyncadd [#allocation7], 4294966656  ;;  %vm59_vm0 = vcmask 7168   ;;  %v269_v0 = vmov 0.0|0.0   ;;  %v270_v1 = vmov 0.0   ;;  %vm271_vm1 = vmmov 0  }
  0x36   :  { %180 = vmatprep.subr.bf16.mxu0 %v269_v0  ;;  %60 = vst.msk [vmem:[#allocation2] sm:$0xff] %vm59_vm0, %v270_v1  ;;  %177 = vmatprep.mubr.msk.f32.mxu0 %vm271_vm1, %v270_v1  ;;  %v62_v2 = vld [vmem:[#allocation8] sm:$0xff]  ;;  %v63_v3 = vld [vmem:[#allocation8 + $0x8] sm:$0xff]  ;;  %v64_v4 = vld [vmem:[#allocation8 + $0x10] sm:$0xff]  ;;  %vm66_vm2 = vcmask 261120   ;;  %v154_v17 = vstv %s345_s3 }
  0x37   :  { %v181_v5 = vpack.c.bf16 %v63_v3, %v62_v2  ;;  %v65_v6 = vld [vmem:[#allocation8 + $0x18] sm:$0xff]  ;;  %v61_v8 = vld [vmem:[#allocation4] sm:$0xff] }
  0x38   :  { %v184_v7 = vpack.c.bf16 %v65_v6, %v64_v4  ;;  %v141_v9 = vld [vmem:[#allocation6] sm:$0xff] }
  0x39   :  { %182 = vmatpush3.bf16.msra.mxu0 %v181_v5 }
  0x3a   :  { %183 = vmatprep.subr.bf16.mxu0 %v269_v0 }
  0x3d   :  { %185 = vmatpush3.bf16.msra.mxu0 %v184_v7  ;;  %v140_v14 = vld [vmem:[#allocation2] sm:$0xff] }
  0x40   :  { %178 = vmatmul.mubr.msk.f32.vlgmr.msra.gmra.mrb[0].mxu0 %vm66_vm2, %v61_v8 }
 0x113   :  { %v136_v10 = vpop.f32.mrb[0].mxu0 }
 0x114   :  { %v142_v11 = vmul.f32 %v141_v9, %v136_v10  ;;  %v179_v12 = vpop.f32.mrb[1].mxu0 }
 0x116   :  { %v143_v13 = vsel %vm66_vm2, %v142_v11, 0.0 }
 0x117   :  { %144 = vadd.xlane.f32.xlu0 %v143_v13 }
 0x1a4   :  { %v145_v15 = vpop.xlane.xlu0 %144 }
 0x1a5   :  { %v146_v16 = vadd.f32 %v145_v15, %v140_v14 }
 0x1a7   :  { %148 = vst.msk [vmem:[#allocation2] sm:$0xff] %vm59_vm0, %v146_v16 }
 0x1ae   :  { %v152_v18 = vld [vmem:[#allocation2] sm:$0xff] }
 0x1af   :  { %v155_v19 = vadd.f32 %v154_v17, %v152_v18 }
 0x1b1   :  { %156 = vst.msk [vmem:[%s346_s4] sm:$0xff] %vm59_vm0, %v155_v19 }
 0x1b2   :  { %161 = vsyncpa [#allocation5], 1 }
 0x1b3   :  { %162 = vsyncpa [#allocation7], 1 }

</bundles_post_ra>
